<compile_context>
chip_gen: v5e
topology: v5e:2x2
jax: 0.10.0
libtpu: 0.0.40
codegen_flags: <defaults>
</compile_context>

<pallas_src>
import functools

import jax
import jax.numpy as jnp
from jax.experimental import pallas as pl
from jax.experimental.pallas import tpu as pltpu

LANE = 128      # TPU lane width (last-dim tiling)
SUBLANE = 8     # TPU sublane width (second-to-last-dim tiling)


def _round_up(n, m):
    return ((n + m - 1) // m) * m


def _pad_axis(a, axis, target):
    pad = target - a.shape[axis]
    if pad <= 0:
        return a
    widths = [(0, 0)] * a.ndim
    widths[axis] = (0, pad)
    return jnp.pad(a, widths)


# ---------------------------------------------------------------------------
# Kernel: one batch tile of the full DAN forward; weight stack VMEM-resident.
# ---------------------------------------------------------------------------
def dan_kernel(x_ref, w1_ref, b1_ref, wh_ref, bh_ref, wo_ref, bo_ref, o_ref):
    """
    x_ref : (TB, Fp)  f32  (cast to bf16 in-kernel)
    w1_ref: (Fp, Hp)  bf16     b1_ref: (1, Hp)  f32
    wh_ref: (L, Hp, Hp) bf16   bh_ref: (L, 1, Hp) f32
    wo_ref: (Hp, Op)  bf16     bo_ref: (1, Op)  f32
    o_ref : (TB, Op)  f32
    """
    # fc1 + ReLU (bf16 MXU operands, f32 accumulate, f32 bias/ReLU on the VPU)
    x = x_ref[...].astype(jnp.bfloat16)
    h = jnp.dot(x, w1_ref[...], preferred_element_type=jnp.float32)
    h = jnp.maximum(h + b1_ref[...], 0.0)

    # hidden stack (depth - 2 layers), statically unrolled
    for l in range(wh_ref.shape[0]):
        h = jnp.dot(h.astype(jnp.bfloat16), wh_ref[l],
                    preferred_element_type=jnp.float32)
        h = jnp.maximum(h + bh_ref[l], 0.0)

    # fc_out (no activation)
    out = jnp.dot(h.astype(jnp.bfloat16), wo_ref[...],
                  preferred_element_type=jnp.float32)
    o_ref[...] = (out + bo_ref[...]).astype(o_ref.dtype)


# ---------------------------------------------------------------------------
# One-time parameter preparation (hoisted out of the per-call hot path).
# ---------------------------------------------------------------------------
def prepare_params(w1, b1, wh, bh, wo, bo):
    """Pad weights to lane-dense shapes and cast to bf16 ONCE.

    Zero padding is mathematically inert here: zero rows/cols in W, zero bias
    in padded columns, ReLU(0) = 0. Returns (padded_param_tuple, out_size).
    """
    in_size, hid = w1.shape
    out_size = wo.shape[1]
    fp = _round_up(in_size, LANE)
    hp = _round_up(hid, LANE)
    op = _round_up(out_size, LANE)

    w1_p = _pad_axis(_pad_axis(w1, 0, fp), 1, hp).astype(jnp.bfloat16)
    b1_p = _pad_axis(b1, 1, hp).astype(jnp.float32)
    wh_p = _pad_axis(_pad_axis(wh, 1, hp), 2, hp).astype(jnp.bfloat16)
    bh_p = _pad_axis(bh, 2, hp).astype(jnp.float32)
    wo_p = _pad_axis(_pad_axis(wo, 0, hp), 1, op).astype(jnp.bfloat16)
    bo_p = _pad_axis(bo, 1, op).astype(jnp.float32)
    return (w1_p, b1_p, wh_p, bh_p, wo_p, bo_p), out_size


def default_num_batch_tiles():
    """2 'parallel' batch tiles on multi-TensorCore parts (v7x), else 1."""
    try:
        kind = jax.devices()[0].device_kind.lower()
    except Exception:
        return 1
    return 2 if ("v7" in kind or "tpu7" in kind) else 1


# ---------------------------------------------------------------------------
# Jitted forward: pads x's batch, launches the kernel, (optionally) slices.
# ---------------------------------------------------------------------------
@functools.partial(
    jax.jit,
    static_argnames=("out_size", "num_tiles", "single_buffer_weights",
                     "padded_output"))
def dan_forward(x, w1_p, b1_p, wh_p, bh_p, wo_p, bo_p, *, out_size,
                num_tiles=1, single_buffer_weights=True, padded_output=False):
    batch, in_size = x.shape
    fp, hp = w1_p.shape
    op = wo_p.shape[1]
    n_hidden = wh_p.shape[0]
    assert in_size <= fp, "x has more features than the prepared W1"

    # Batch tiling: one full-batch step on single-TC parts (v5e/v6e),
    # `num_tiles` parallel tiles on multi-TC parts (v7x).
    bp = _round_up(batch, SUBLANE)
    if num_tiles > 1 and bp % num_tiles == 0 and (bp // num_tiles) % SUBLANE == 0:
        tb = bp // num_tiles
    else:
        tb = bp
    grid = (bp // tb,)

    # Only x needs per-call padding; it stays f32 (cast to bf16 in-kernel).
    x_p = _pad_axis(_pad_axis(x, 1, fp), 0, bp)

    vmem = pltpu.MemorySpace.VMEM

    def weight_spec(shape, index_map):
        # Constant index_map -> same block every grid step (VMEM-resident).
        # Single pipeline buffer: a second buffer is pure waste for revisited
        # blocks and would blow VMEM for the realistic F~100k W1.
        kwargs = dict(memory_space=vmem)
        if single_buffer_weights:
            kwargs["pipeline_mode"] = pl.Buffered(buffer_count=1)
        return pl.BlockSpec(shape, index_map, **kwargs)

    flops = 2 * bp * (fp * hp + n_hidden * hp * hp + hp * op)
    # Weights counted once: the constant index_map dedups their DMA across
    # grid steps. Keep in sync if the grid/tiling changes.
    bytes_accessed = (
        bp * fp * 4                                       # x (f32)
        + (fp * hp + n_hidden * hp * hp + hp * op) * 2    # weights (bf16)
        + (hp + n_hidden * hp + op) * 4                   # biases (f32)
        + bp * op * 4                                     # output (f32)
    )

    out_padded = pl.pallas_call(
        dan_kernel,
        out_shape=jax.ShapeDtypeStruct((bp, op), jnp.float32),
        grid=grid,
        in_specs=[
            # activations: one (tb, Fp) tile per grid step
            pl.BlockSpec((tb, fp), lambda i: (i, 0), memory_space=vmem),
            # weights / biases: full arrays, same block every step -> resident
            weight_spec((fp, hp), lambda i: (0, 0)),
            weight_spec((1, hp), lambda i: (0, 0)),
            weight_spec((n_hidden, hp, hp), lambda i: (0, 0, 0)),
            weight_spec((n_hidden, 1, hp), lambda i: (0, 0, 0)),
            weight_spec((hp, op), lambda i: (0, 0)),
            weight_spec((1, op), lambda i: (0, 0)),
        ],
        out_specs=pl.BlockSpec((tb, op), lambda i: (i, 0), memory_space=vmem),
        compiler_params=pltpu.CompilerParams(
            dimension_semantics=("parallel",)),
        cost_estimate=pl.CostEstimate(
            flops=flops, transcendentals=0, bytes_accessed=bytes_accessed),
    )(x_p, w1_p, b1_p, wh_p, bh_p, wo_p, bo_p)

    if padded_output:
        return out_padded            # (bp, 128) lane-dense; consumer must mask
    return out_padded[:batch, :out_size]


# Non-jitted entry point: falls back (once) to double-buffered weight specs if
# the installed jax/Mosaic rejects pipeline_mode=pl.Buffered(1) here.
_SINGLE_BUFFER_WEIGHTS_OK = None


def dan_apply(x, padded_params, out_size, num_tiles=1, padded_output=False):
    global _SINGLE_BUFFER_WEIGHTS_OK
    if _SINGLE_BUFFER_WEIGHTS_OK is None:
        try:
            out = dan_forward(x, *padded_params, out_size=out_size,
                              num_tiles=num_tiles, single_buffer_weights=True,
                              padded_output=padded_output)
            jax.block_until_ready(out)
            _SINGLE_BUFFER_WEIGHTS_OK = True
            return out
        except Exception:
            _SINGLE_BUFFER_WEIGHTS_OK = False
    return dan_forward(x, *padded_params, out_size=out_size,
                       num_tiles=num_tiles,
                       single_buffer_weights=_SINGLE_BUFFER_WEIGHTS_OK,
                       padded_output=padded_output)


# ---------------------------------------------------------------------------
# Parameter init (PyTorch nn.Linear-style) and pure-f32 reference.
# ---------------------------------------------------------------------------
def init_params(key, input_size, hidden_size, output_size, depth):
    """U(-1/sqrt(fan_in), 1/sqrt(fan_in)); weights in (in, out) layout."""
    keys = jax.random.split(key, 2 * depth)

    def linear(kw, kb, fan_in, fan_out):
        bound = 1.0 / jnp.sqrt(jnp.float32(fan_in))
        w = jax.random.uniform(kw, (fan_in, fan_out), jnp.float32, -bound, bound)
        b = jax.random.uniform(kb, (1, fan_out), jnp.float32, -bound, bound)
        return w, b

    w1, b1 = linear(keys[0], keys[1], input_size, hidden_size)

    wh_list, bh_list = [], []
    for l in range(depth - 2):
        w, b = linear(keys[2 + 2 * l], keys[3 + 2 * l], hidden_size, hidden_size)
        wh_list.append(w)
        bh_list.append(b)
    wh = jnp.stack(wh_list, axis=0)              # (depth-2, H, H)
    bh = jnp.stack(bh_list, axis=0)              # (depth-2, 1, H)

    wo, bo = linear(keys[-2], keys[-1], hidden_size, output_size)
    return w1, b1, wh, bh, wo, bo


def dan_reference(x, w1, b1, wh, bh, wo, bo):
    """True f32 reference matching PyTorch nn.Linear numerics."""
    h = jnp.maximum(x @ w1 + b1, 0.0)
    for l in range(wh.shape[0]):
        h = jnp.maximum(h @ wh[l] + bh[l], 0.0)
    return h @ wo + bo


if __name__ == "__main__":
    DEPTH = 3
    BATCH, INPUT_SIZE, HIDDEN_SIZE, OUTPUT_SIZE = 16, 96, 64, 20

    key = jax.random.PRNGKey(0)
    k_x, k_p = jax.random.split(key)

    x = jax.random.normal(k_x, (BATCH, INPUT_SIZE), jnp.float32)
    params = init_params(k_p, INPUT_SIZE, HIDDEN_SIZE, OUTPUT_SIZE, DEPTH)

    # One-time, off the hot path: pad + bf16-cast the weight stack.
    padded_params, out_size = prepare_params(*params)
    num_tiles = default_num_batch_tiles()

    out = dan_apply(x, padded_params, out_size, num_tiles=num_tiles)
    out = jax.block_until_ready(out)

    ref = dan_reference(x, *params)
    assert out.shape == (BATCH, OUTPUT_SIZE)
    assert jnp.allclose(out, ref, atol=5e-2, rtol=5e-2), float(
        jnp.max(jnp.abs(out - ref)))

    print("KERNEL_OK")
</pallas_src>

<mosaic_0001>
module attributes {stable_mosaic.version = 11 : i64} {
  func.func @dan_kernel(%arg0: i32, %arg1: memref<16x128xf32, #tpu.memory_space<vmem>>, %arg2: memref<128x128xbf16, #tpu.memory_space<vmem>>, %arg3: memref<1x128xf32, #tpu.memory_space<vmem>>, %arg4: memref<1x128x128xbf16, #tpu.memory_space<vmem>>, %arg5: memref<1x1x128xf32, #tpu.memory_space<vmem>>, %arg6: memref<128x128xbf16, #tpu.memory_space<vmem>>, %arg7: memref<1x128xf32, #tpu.memory_space<vmem>>, %arg8: memref<16x128xf32, #tpu.memory_space<vmem>>) attributes {dimension_semantics = [#tpu.dimension_semantics<parallel>], iteration_bounds = array<i64: 1>, scalar_prefetch = 0 : i64, scratch_operands = 0 : i64, tpu.core_type = #tpu.core_type<tc>, window_params = [{transform_indices = @transform_0, window_bounds = array<i64: 16, 128>}, {pipeline_mode = #tpu.pipeline_mode<synchronous>, transform_indices = @transform_1, window_bounds = array<i64: 128, 128>}, {pipeline_mode = #tpu.pipeline_mode<synchronous>, transform_indices = @transform_2, window_bounds = array<i64: 1, 128>}, {pipeline_mode = #tpu.pipeline_mode<synchronous>, transform_indices = @transform_3, window_bounds = array<i64: 1, 128, 128>}, {pipeline_mode = #tpu.pipeline_mode<synchronous>, transform_indices = @transform_4, window_bounds = array<i64: 1, 1, 128>}, {pipeline_mode = #tpu.pipeline_mode<synchronous>, transform_indices = @transform_5, window_bounds = array<i64: 128, 128>}, {pipeline_mode = #tpu.pipeline_mode<synchronous>, transform_indices = @transform_6, window_bounds = array<i64: 1, 128>}, {transform_indices = @transform_7, window_bounds = array<i64: 16, 128>}]} {
    %c0 = arith.constant 0 : index
    %c0_0 = arith.constant 0 : index
    %0 = vector.load %arg1[%c0, %c0_0] : memref<16x128xf32, #tpu.memory_space<vmem>>, vector<16x128xf32>
    %1 = arith.truncf %0 : vector<16x128xf32> to vector<16x128xbf16>
    %c0_1 = arith.constant 0 : index
    %c0_2 = arith.constant 0 : index
    %2 = vector.load %arg2[%c0_1, %c0_2] : memref<128x128xbf16, #tpu.memory_space<vmem>>, vector<128x128xbf16>
    %cst = arith.constant dense<0.000000e+00> : vector<16x128xf32>
    %3 = tpu.matmul %1, %2, %cst {dimension_numbers = #tpu.dot_dimension_numbers<[1], [0], [0], [1], [0, 0, 1, 1], [], []>} : vector<16x128xbf16>, vector<128x128xbf16>, vector<16x128xf32> -> vector<16x128xf32>
    %c0_3 = arith.constant 0 : index
    %c0_4 = arith.constant 0 : index
    %4 = vector.load %arg3[%c0_3, %c0_4] : memref<1x128xf32, #tpu.memory_space<vmem>>, vector<1x128xf32>
    %5 = vector.broadcast %4 : vector<1x128xf32> to vector<16x128xf32>
    %6 = arith.addf %3, %5 : vector<16x128xf32>
    %cst_5 = arith.constant 0.000000e+00 : f32
    %7 = vector.broadcast %cst_5 : f32 to vector<16x128xf32>
    %8 = arith.maximumf %6, %7 : vector<16x128xf32>
    %9 = arith.truncf %8 : vector<16x128xf32> to vector<16x128xbf16>
    %c0_6 = arith.constant 0 : index
    %c0_7 = arith.constant 0 : index
    %c0_8 = arith.constant 0 : index
    %10 = vector.load %arg4[%c0_6, %c0_7, %c0_8] : memref<1x128x128xbf16, #tpu.memory_space<vmem>>, vector<1x128x128xbf16>
    %11 = vector.shape_cast %10 : vector<1x128x128xbf16> to vector<128x128xbf16>
    %cst_9 = arith.constant dense<0.000000e+00> : vector<16x128xf32>
    %12 = tpu.matmul %9, %11, %cst_9 {dimension_numbers = #tpu.dot_dimension_numbers<[1], [0], [0], [1], [0, 0, 1, 1], [], []>} : vector<16x128xbf16>, vector<128x128xbf16>, vector<16x128xf32> -> vector<16x128xf32>
    %c0_10 = arith.constant 0 : index
    %c0_11 = arith.constant 0 : index
    %c0_12 = arith.constant 0 : index
    %13 = vector.load %arg5[%c0_10, %c0_11, %c0_12] : memref<1x1x128xf32, #tpu.memory_space<vmem>>, vector<1x1x128xf32>
    %14 = vector.shape_cast %13 : vector<1x1x128xf32> to vector<1x128xf32>
    %15 = vector.broadcast %14 : vector<1x128xf32> to vector<16x128xf32>
    %16 = arith.addf %12, %15 : vector<16x128xf32>
    %cst_13 = arith.constant 0.000000e+00 : f32
    %17 = vector.broadcast %cst_13 : f32 to vector<16x128xf32>
    %18 = arith.maximumf %16, %17 : vector<16x128xf32>
    %19 = arith.truncf %18 : vector<16x128xf32> to vector<16x128xbf16>
    %c0_14 = arith.constant 0 : index
    %c0_15 = arith.constant 0 : index
    %20 = vector.load %arg6[%c0_14, %c0_15] : memref<128x128xbf16, #tpu.memory_space<vmem>>, vector<128x128xbf16>
    %cst_16 = arith.constant dense<0.000000e+00> : vector<16x128xf32>
    %21 = tpu.matmul %19, %20, %cst_16 {dimension_numbers = #tpu.dot_dimension_numbers<[1], [0], [0], [1], [0, 0, 1, 1], [], []>} : vector<16x128xbf16>, vector<128x128xbf16>, vector<16x128xf32> -> vector<16x128xf32>
    %c0_17 = arith.constant 0 : index
    %c0_18 = arith.constant 0 : index
    %22 = vector.load %arg7[%c0_17, %c0_18] : memref<1x128xf32, #tpu.memory_space<vmem>>, vector<1x128xf32>
    %23 = vector.broadcast %22 : vector<1x128xf32> to vector<16x128xf32>
    %24 = arith.addf %21, %23 : vector<16x128xf32>
    %c0_19 = arith.constant 0 : index
    %c0_20 = arith.constant 0 : index
    %25 = vector.load %arg8[%c0_19, %c0_20] : memref<16x128xf32, #tpu.memory_space<vmem>>, vector<16x128xf32>
    tpu.vector_store %arg8[%c0_19, %c0_20], %24 {strides = array<i32>} : memref<16x128xf32, #tpu.memory_space<vmem>>, vector<16x128xf32>,
    return
  }
  func.func @transform_0(%arg0: i32) -> (i32, i32) {
    %c0_i32 = arith.constant 0 : i32
    %c0_i32_0 = arith.constant 0 : i32
    return %arg0, %c0_i32 : i32, i32
  }
  func.func @transform_1(%arg0: i32) -> (i32, i32) {
    %c0_i32 = arith.constant 0 : i32
    %c0_i32_0 = arith.constant 0 : i32
    %c0_i32_1 = arith.constant 0 : i32
    return %c0_i32, %c0_i32_0 : i32, i32
  }
  func.func @transform_2(%arg0: i32) -> (i32, i32) {
    %c0_i32 = arith.constant 0 : i32
    %c0_i32_0 = arith.constant 0 : i32
    %c0_i32_1 = arith.constant 0 : i32
    return %c0_i32, %c0_i32_0 : i32, i32
  }
  func.func @transform_3(%arg0: i32) -> (i32, i32, i32) {
    %c0_i32 = arith.constant 0 : i32
    %c0_i32_0 = arith.constant 0 : i32
    %c0_i32_1 = arith.constant 0 : i32
    %c0_i32_2 = arith.constant 0 : i32
    return %c0_i32, %c0_i32_0, %c0_i32_1 : i32, i32, i32
  }
  func.func @transform_4(%arg0: i32) -> (i32, i32, i32) {
    %c0_i32 = arith.constant 0 : i32
    %c0_i32_0 = arith.constant 0 : i32
    %c0_i32_1 = arith.constant 0 : i32
    %c0_i32_2 = arith.constant 0 : i32
    return %c0_i32, %c0_i32_0, %c0_i32_1 : i32, i32, i32
  }
  func.func @transform_5(%arg0: i32) -> (i32, i32) {
    %c0_i32 = arith.constant 0 : i32
    %c0_i32_0 = arith.constant 0 : i32
    %c0_i32_1 = arith.constant 0 : i32
    return %c0_i32, %c0_i32_0 : i32, i32
  }
  func.func @transform_6(%arg0: i32) -> (i32, i32) {
    %c0_i32 = arith.constant 0 : i32
    %c0_i32_0 = arith.constant 0 : i32
    %c0_i32_1 = arith.constant 0 : i32
    return %c0_i32, %c0_i32_0 : i32, i32
  }
  func.func @transform_7(%arg0: i32) -> (i32, i32) {
    %c0_i32 = arith.constant 0 : i32
    %c0_i32_0 = arith.constant 0 : i32
    return %arg0, %c0_i32 : i32, i32
  }
}

module attributes {stable_mosaic.version = 11 : i64} {
  func.func @dan_kernel(%arg0: i32, %arg1: memref<16x128xf32, #tpu.memory_space<vmem>>, %arg2: memref<128x128xbf16, #tpu.memory_space<vmem>>, %arg3: memref<1x128xf32, #tpu.memory_space<vmem>>, %arg4: memref<1x128x128xbf16, #tpu.memory_space<vmem>>, %arg5: memref<1x1x128xf32, #tpu.memory_space<vmem>>, %arg6: memref<128x128xbf16, #tpu.memory_space<vmem>>, %arg7: memref<1x128xf32, #tpu.memory_space<vmem>>, %arg8: memref<16x128xf32, #tpu.memory_space<vmem>>) attributes {dimension_semantics = [#tpu.dimension_semantics<parallel>], iteration_bounds = array<i64: 1>, scalar_prefetch = 0 : i64, scratch_operands = 0 : i64, tpu.core_type = #tpu.core_type<tc>, window_params = [{transform_indices = @transform_0, window_bounds = array<i64: 16, 128>}, {pipeline_mode = #tpu.pipeline_mode<synchronous>, transform_indices = @transform_1, window_bounds = array<i64: 128, 128>}, {pipeline_mode = #tpu.pipeline_mode<synchronous>, transform_indices = @transform_2, window_bounds = array<i64: 1, 128>}, {pipeline_mode = #tpu.pipeline_mode<synchronous>, transform_indices = @transform_3, window_bounds = array<i64: 1, 128, 128>}, {pipeline_mode = #tpu.pipeline_mode<synchronous>, transform_indices = @transform_4, window_bounds = array<i64: 1, 1, 128>}, {pipeline_mode = #tpu.pipeline_mode<synchronous>, transform_indices = @transform_5, window_bounds = array<i64: 128, 128>}, {pipeline_mode = #tpu.pipeline_mode<synchronous>, transform_indices = @transform_6, window_bounds = array<i64: 1, 128>}, {transform_indices = @transform_7, window_bounds = array<i64: 16, 128>}]} {
    %c0 = arith.constant 0 : index
    %c0_0 = arith.constant 0 : index
    %0 = vector.load %arg1[%c0, %c0_0] : memref<16x128xf32, #tpu.memory_space<vmem>>, vector<16x128xf32>
    %1 = arith.truncf %0 : vector<16x128xf32> to vector<16x128xbf16>
    %c0_1 = arith.constant 0 : index
    %c0_2 = arith.constant 0 : index
    %2 = vector.load %arg2[%c0_1, %c0_2] : memref<128x128xbf16, #tpu.memory_space<vmem>>, vector<128x128xbf16>
    %cst = arith.constant dense<0.000000e+00> : vector<16x128xf32>
    %3 = tpu.matmul %1, %2, %cst {dimension_numbers = #tpu.dot_dimension_numbers<[1], [0], [0], [1], [0, 0, 1, 1], [], []>} : vector<16x128xbf16>, vector<128x128xbf16>, vector<16x128xf32> -> vector<16x128xf32>
    %c0_3 = arith.constant 0 : index
    %c0_4 = arith.constant 0 : index
    %4 = vector.load %arg3[%c0_3, %c0_4] : memref<1x128xf32, #tpu.memory_space<vmem>>, vector<1x128xf32>
    %5 = vector.broadcast %4 : vector<1x128xf32> to vector<16x128xf32>
    %6 = arith.addf %3, %5 : vector<16x128xf32>
    %cst_5 = arith.constant 0.000000e+00 : f32
    %7 = vector.broadcast %cst_5 : f32 to vector<16x128xf32>
    %8 = arith.maximumf %6, %7 : vector<16x128xf32>
    %9 = arith.truncf %8 : vector<16x128xf32> to vector<16x128xbf16>
    %c0_6 = arith.constant 0 : index
    %c0_7 = arith.constant 0 : index
    %c0_8 = arith.constant 0 : index
    %10 = vector.load %arg4[%c0_6, %c0_7, %c0_8] : memref<1x128x128xbf16, #tpu.memory_space<vmem>>, vector<1x128x128xbf16>
    %11 = vector.shape_cast %10 : vector<1x128x128xbf16> to vector<128x128xbf16>
    %cst_9 = arith.constant dense<0.000000e+00> : vector<16x128xf32>
    %12 = tpu.matmul %9, %11, %cst_9 {dimension_numbers = #tpu.dot_dimension_numbers<[1], [0], [0], [1], [0, 0, 1, 1], [], []>} : vector<16x128xbf16>, vector<128x128xbf16>, vector<16x128xf32> -> vector<16x128xf32>
    %c0_10 = arith.constant 0 : index
    %c0_11 = arith.constant 0 : index
    %c0_12 = arith.constant 0 : index
    %13 = vector.load %arg5[%c0_10, %c0_11, %c0_12] : memref<1x1x128xf32, #tpu.memory_space<vmem>>, vector<1x1x128xf32>
    %14 = vector.shape_cast %13 : vector<1x1x128xf32> to vector<1x128xf32>
    %15 = vector.broadcast %14 : vector<1x128xf32> to vector<16x128xf32>
    %16 = arith.addf %12, %15 : vector<16x128xf32>
    %cst_13 = arith.constant 0.000000e+00 : f32
    %17 = vector.broadcast %cst_13 : f32 to vector<16x128xf32>
    %18 = arith.maximumf %16, %17 : vector<16x128xf32>
    %19 = arith.truncf %18 : vector<16x128xf32> to vector<16x128xbf16>
    %c0_14 = arith.constant 0 : index
    %c0_15 = arith.constant 0 : index
    %20 = vector.load %arg6[%c0_14, %c0_15] : memref<128x128xbf16, #tpu.memory_space<vmem>>, vector<128x128xbf16>
    %cst_16 = arith.constant dense<0.000000e+00> : vector<16x128xf32>
    %21 = tpu.matmul %19, %20, %cst_16 {dimension_numbers = #tpu.dot_dimension_numbers<[1], [0], [0], [1], [0, 0, 1, 1], [], []>} : vector<16x128xbf16>, vector<128x128xbf16>, vector<16x128xf32> -> vector<16x128xf32>
    %c0_17 = arith.constant 0 : index
    %c0_18 = arith.constant 0 : index
    %22 = vector.load %arg7[%c0_17, %c0_18] : memref<1x128xf32, #tpu.memory_space<vmem>>, vector<1x128xf32>
    %23 = vector.broadcast %22 : vector<1x128xf32> to vector<16x128xf32>
    %24 = arith.addf %21, %23 : vector<16x128xf32>
    %c0_19 = arith.constant 0 : index
    %c0_20 = arith.constant 0 : index
    %25 = vector.load %arg8[%c0_19, %c0_20] : memref<16x128xf32, #tpu.memory_space<vmem>>, vector<16x128xf32>
    tpu.vector_store %arg8[%c0_19, %c0_20], %24 {strides = array<i32>} : memref<16x128xf32, #tpu.memory_space<vmem>>, vector<16x128xf32>,
    return
  }
  func.func @transform_0(%arg0: i32) -> (i32, i32) {
    %c0_i32 = arith.constant 0 : i32
    %c0_i32_0 = arith.constant 0 : i32
    return %arg0, %c0_i32 : i32, i32
  }
  func.func @transform_1(%arg0: i32) -> (i32, i32) {
    %c0_i32 = arith.constant 0 : i32
    %c0_i32_0 = arith.constant 0 : i32
    %c0_i32_1 = arith.constant 0 : i32
    return %c0_i32, %c0_i32_0 : i32, i32
  }
  func.func @transform_2(%arg0: i32) -> (i32, i32) {
    %c0_i32 = arith.constant 0 : i32
    %c0_i32_0 = arith.constant 0 : i32
    %c0_i32_1 = arith.constant 0 : i32
    return %c0_i32, %c0_i32_0 : i32, i32
  }
  func.func @transform_3(%arg0: i32) -> (i32, i32, i32) {
    %c0_i32 = arith.constant 0 : i32
    %c0_i32_0 = arith.constant 0 : i32
    %c0_i32_1 = arith.constant 0 : i32
    %c0_i32_2 = arith.constant 0 : i32
    return %c0_i32, %c0_i32_0, %c0_i32_1 : i32, i32, i32
  }
  func.func @transform_4(%arg0: i32) -> (i32, i32, i32) {
    %c0_i32 = arith.constant 0 : i32
    %c0_i32_0 = arith.constant 0 : i32
    %c0_i32_1 = arith.constant 0 : i32
    %c0_i32_2 = arith.constant 0 : i32
    return %c0_i32, %c0_i32_0, %c0_i32_1 : i32, i32, i32
  }
  func.func @transform_5(%arg0: i32) -> (i32, i32) {
    %c0_i32 = arith.constant 0 : i32
    %c0_i32_0 = arith.constant 0 : i32
    %c0_i32_1 = arith.constant 0 : i32
    return %c0_i32, %c0_i32_0 : i32, i32
  }
  func.func @transform_6(%arg0: i32) -> (i32, i32) {
    %c0_i32 = arith.constant 0 : i32
    %c0_i32_0 = arith.constant 0 : i32
    %c0_i32_1 = arith.constant 0 : i32
    return %c0_i32, %c0_i32_0 : i32, i32
  }
  func.func @transform_7(%arg0: i32) -> (i32, i32) {
    %c0_i32 = arith.constant 0 : i32
    %c0_i32_0 = arith.constant 0 : i32
    return %arg0, %c0_i32 : i32, i32
  }
}

</mosaic_0001>

<bundles_post_ra>
// kernel: dan_forward.1
= control target key start
LH: loop header
LB: loop body
LE: loop exit
PB: predicated region body
PF: predicated region fallthrough
CT: control target
= control target key end

     0   :  { %12 = vsyncpa [#allocation3], 0  ;;  %s659_s0 = inlined_call_operand.vmem [shape: f32[16,128], index: 0, kind: input, shape index: {}]   ;;  %s660_s1 = inlined_call_operand.hbm [shape: bf16[128,128], index: 1, kind: input, shape index: {}]   ;;  %s661_s2 = inlined_call_operand.vmem [shape: f32[1,128], index: 2, kind: input, shape index: {}]   ;;  %s662_s3 = inlined_call_operand.hbm [shape: bf16[1,128,128], index: 3, kind: input, shape index: {}]   ;;  %s663_s4 = inlined_call_operand.vmem [shape: f32[1,1,128], index: 4, kind: input, shape index: {}]   ;;  %s664_s5 = inlined_call_operand.hbm [shape: bf16[128,128], index: 5, kind: input, shape index: {}]   ;;  %s665_s6 = inlined_call_operand.vmem [shape: f32[1,128], index: 6, kind: input, shape index: {}]   ;;  %s666_s7 = inlined_call_operand.hbm [shape: f32[16,128], index: 7, kind: output, shape index: {}]  }
   0x1   :  { %13 = vsyncpa [#allocation6], 0 }
   0x2   :  { %14 = vsyncpa [#allocation4], 0  ;;  %s36_s26 = sshll.u32 %s662_s3, 4  ;;  %s584_s27 = smov [#allocation5]   ;;  %s37_s26 = int_to_ptr.hbm [resolvable:$true] %s36_s26 }
   0x3   :  { %s38_s28 = sshll.u32 %s584_s27, 4  ;;  %s21_s8 = sshll.u32 %s660_s1, 4  ;;  %s39_s28 = int_to_ptr.vmem [resolvable:$true] %s38_s28  ;;  %s22_s8 = int_to_ptr.hbm [resolvable:$true] %s21_s8 }
   0x4   :  { %s585_s9 = smov 64   ;;  %s586_s10 = smov 4  }
   0x5   :  { %44 = dma.hbm_to_vmem [thread:$0]  %s37_s26, 1024, %s39_s28, [#allocation6], %s585_s9, %s585_s9, %s586_s10  }
   0x6   :  { %s587_s11 = smov [#allocation2]   ;;  %s51_s15 = sshll.u32 %s664_s5, 4  ;;  %s52_s15 = int_to_ptr.hbm [resolvable:$true] %s51_s15 }
   0x7   :  { %s23_s12 = sshll.u32 %s587_s11, 4  ;;  %s588_s3 = smov [#allocation7]   ;;  %s24_s12 = int_to_ptr.vmem [resolvable:$true] %s23_s12 }
   0x8   :  { %29 = dma.hbm_to_vmem [thread:$0]  %s22_s8, 1024, %s24_s12, [#allocation3], %s585_s9, %s585_s9, %s586_s10  }
   0x9   :  { %s53_s16 = sshll.u32 %s588_s3, 4  ;;  %s54_s16 = int_to_ptr.vmem [resolvable:$true] %s53_s16 }
   0xa   :  { %59 = dma.hbm_to_vmem [thread:$0]  %s52_s15, 1024, %s54_s16, [#allocation6], %s585_s9, %s585_s9, %s586_s10  }
   0xb   :  { %578 = dma.done.wait [#allocation3], 1024  }
   0xc   :  { %579 = vsyncadd [#allocation3], 4294966272 }
   0xd   :  { %580 = dma.done.wait [#allocation6], 2048  }
   0xe   :  { %581 = vsyncadd [#allocation6], 4294965248  ;;  %v454_v0 = vld [vmem:[#allocation2 + $0x38] sm:$0xff]  ;;  %v453_v1 = vld [vmem:[#allocation2 + $0x30] sm:$0xff]  ;;  %s589_s23 = smov [#allocation8]   ;;  %s590_s27 = smov 128  }
   0xf   :  { %145 = vmatpush.bf16.msra.mxu0 %v454_v0  ;;  %v462_v2 = vld [vmem:[#allocation5 + $0x38] sm:$0xff]  ;;  %v461_v3 = vld [vmem:[#allocation5 + $0x30] sm:$0xff]  ;;  %v452_v4 = vld [vmem:[#allocation2 + $0x28] sm:$0xff]  ;;  %s335_s24 = sshll.u32 %s589_s23, 4  ;;  %s591_s28 = smov 8   ;;  %s336_s24 = int_to_ptr.vmem [resolvable:$true] %s335_s24 }
  0x10   :  { %230 = vmatpush.bf16.msra.mxu1 %v462_v2  ;;  %v460_v5 = vld [vmem:[#allocation5 + $0x28] sm:$0xff]  ;;  %v451_v6 = vld [vmem:[#allocation2 + $0x20] sm:$0xff]  ;;  %v450_v8 = vld [vmem:[#allocation2 + $0x18] sm:$0xff] }
  0x11   :  { %v459_v7 = vld [vmem:[#allocation5 + $0x20] sm:$0xff]  ;;  %v449_v9 = vld [vmem:[#allocation2 + $0x10] sm:$0xff]  ;;  %v448_v10 = vld [vmem:[#allocation2 + $0x8] sm:$0xff] }
  0x12   :  { %v447_v11 = vld [vmem:[#allocation2] sm:$0xff]  ;;  %v75_v13 = vld [vmem:[%s659_s0 + $0x8] sm:$0xff]  ;;  %v458_v15 = vld [vmem:[#allocation5 + $0x18] sm:$0xff] }
  0x13   :  { %146 = vmatpush.bf16.msra.mxu0 %v453_v1  ;;  %v74_v12 = vld [vmem:[%s659_s0] sm:$0xff]  ;;  %v457_v16 = vld [vmem:[#allocation5 + $0x10] sm:$0xff]  ;;  %v456_v17 = vld [vmem:[#allocation5 + $0x8] sm:$0xff] }
  0x14   :  { %231 = vmatpush.bf16.msra.mxu1 %v461_v3  ;;  %v76_v14 = vpack.c.bf16 %v75_v13, %v74_v12  ;;  %v455_v18 = vld [vmem:[#allocation5] sm:$0xff]  ;;  %v470_v19 = vld [vmem:[#allocation7 + $0x38] sm:$0xff]  ;;  %v469_v20 = vld [vmem:[#allocation7 + $0x30] sm:$0xff] }
  0x15   :  { %315 = vmatpush.bf16.msra.mxu2 %v470_v19  ;;  %v468_v21 = vld [vmem:[#allocation7 + $0x28] sm:$0xff]  ;;  %v467_v22 = vld [vmem:[#allocation7 + $0x20] sm:$0xff]  ;;  %v466_v31 = vld [vmem:[#allocation7 + $0x18] sm:$0xff] }
  0x16   :  { %v479_v24 = vld [vmem:[%s661_s2] ss:$0 sm:$0xff]  ;;  %v465_v32 = vld [vmem:[#allocation7 + $0x10] sm:$0xff]  ;;  %v464_v33 = vld [vmem:[#allocation7 + $0x8] sm:$0xff] }
  0x17   :  { %147 = vmatpush.bf16.msra.mxu0 %v452_v4  ;;  %v463_v34 = vld [vmem:[#allocation7] sm:$0xff] }
  0x18   :  { %232 = vmatpush.bf16.msra.mxu1 %v460_v5  ;;  %v480_v36 = vld [vmem:[%s663_s4] ss:$0 sm:$0xff]  ;;  %s337_s4 = sshll.u32 %s666_s7, 4  ;;  %s338_s4 = int_to_ptr.hbm [resolvable:$true] %s337_s4 }
  0x19   :  { %316 = vmatpush.bf16.msra.mxu2 %v469_v20  ;;  %v481_v43 = vld [vmem:[%s665_s6] ss:$0 sm:$0xff] }
  0x1b   :  { %148 = vmatpush.bf16.msra.mxu0 %v451_v6 }
  0x1c   :  { %233 = vmatpush.bf16.msra.mxu1 %v459_v7 }
  0x1d   :  { %317 = vmatpush.bf16.msra.mxu2 %v468_v21 }
  0x1f   :  { %149 = vmatpush.bf16.msra.mxu0 %v450_v8 }
  0x20   :  { %234 = vmatpush.bf16.msra.mxu1 %v458_v15 }
  0x21   :  { %318 = vmatpush.bf16.msra.mxu2 %v467_v22 }
  0x23   :  { %150 = vmatpush.bf16.msra.mxu0 %v449_v9 }
  0x24   :  { %235 = vmatpush.bf16.msra.mxu1 %v457_v16 }
  0x25   :  { %319 = vmatpush.bf16.msra.mxu2 %v466_v31 }
  0x27   :  { %151 = vmatpush.bf16.msra.mxu0 %v448_v10 }
  0x28   :  { %236 = vmatpush.bf16.msra.mxu1 %v456_v17 }
  0x29   :  { %320 = vmatpush.bf16.msra.mxu2 %v465_v32 }
  0x2b   :  { %152 = vmatpush.bf16.msra.mxu0 %v447_v11 }
  0x2c   :  { %237 = vmatpush.bf16.msra.mxu1 %v455_v18 }
  0x2d   :  { %321 = vmatpush.bf16.msra.mxu2 %v464_v33 }
  0x2e   :  { %153 = vmatmul.bf16.vlgmr.msra.gmra.mxu0 %v76_v14 }
  0x31   :  { %322 = vmatpush.bf16.msra.mxu2 %v463_v34 }
  0xab   :  { %v154_v23 = vpop.f32.mrf.mxu0 }
  0xac   :  { %v155_v25 = vadd.f32 %v479_v24, %v154_v23 }
  0xae   :  { %v159_v28 = vmax.f32 %v155_v25, 0.0 }
  0xb3   :  { %v156_v26 = vpop.f32.mrf.mxu0 }
  0xb4   :  { %v157_v27 = vadd.f32 %v479_v24, %v156_v26 }
  0xb6   :  { %v160_v29 = vmax.f32 %v157_v27, 0.0 }
  0xb8   :  { %v161_v30 = vpack.c.bf16 %v160_v29, %v159_v28 }
  0xba   :  { %238 = vmatmul.bf16.vlgmr.msra.gmra.mxu1 %v161_v30 }
 0x137   :  { %v239_v35 = vpop.f32.mrf.mxu1 }
 0x138   :  { %v240_v37 = vadd.f32 %v480_v36, %v239_v35 }
 0x13a   :  { %v244_v40 = vmax.f32 %v240_v37, 0.0 }
 0x13f   :  { %v241_v38 = vpop.f32.mrf.mxu1 }
 0x140   :  { %v242_v39 = vadd.f32 %v480_v36, %v241_v38 }
 0x142   :  { %v245_v41 = vmax.f32 %v242_v39, 0.0 }
 0x144   :  { %v246_v42 = vpack.c.bf16 %v245_v41, %v244_v40 }
 0x146   :  { %323 = vmatmul.bf16.vlgmr.msra.gmra.mxu2 %v246_v42 }
 0x1c9   :  { %v324_v44 = vpop.f32.mrf.mxu2 }
 0x1ca   :  { %v325_v45 = vadd.f32 %v481_v43, %v324_v44 }
 0x1cc   :  { %329 = vst [vmem:[#allocation8] sm:$0xff] %v325_v45 }
 0x1d1   :  { %v326_v46 = vpop.f32.mrf.mxu2 }
 0x1d2   :  { %v327_v47 = vadd.f32 %v481_v43, %v326_v46 }
 0x1d4   :  { %330 = vst [vmem:[#allocation8 + $0x8] sm:$0xff] %v327_v47 }
 0x1d5   :  { %343 = dma.vmem_to_hbm [thread:$0]  %s336_s24, 256, %s338_s4, [#allocation4], %s590_s27, %s590_s27, %s591_s28  }
 0x1d6   :  { %582 = dma.done.wait [#allocation4], 256  }
 0x1d7   :  { %583 = vsyncadd [#allocation4], 4294967040 }
 0x1d8   :  { %348 = vsyncpa [#allocation3], 1 }
 0x1d9   :  { %349 = vsyncpa [#allocation6], 1 }
 0x1da   :  { %350 = vsyncpa [#allocation4], 1 }

// kernel: dan_forward.1
= control target key start
LH: loop header
LB: loop body
LE: loop exit
PB: predicated region body
PF: predicated region fallthrough
CT: control target
= control target key end

     0   :  { %12 = vsyncpa [#allocation3], 0  ;;  %s659_s0 = inlined_call_operand.vmem [shape: f32[16,128], index: 0, kind: input, shape index: {}]   ;;  %s660_s1 = inlined_call_operand.hbm [shape: bf16[128,128], index: 1, kind: input, shape index: {}]   ;;  %s661_s2 = inlined_call_operand.vmem [shape: f32[1,128], index: 2, kind: input, shape index: {}]   ;;  %s662_s3 = inlined_call_operand.hbm [shape: bf16[1,128,128], index: 3, kind: input, shape index: {}]   ;;  %s663_s4 = inlined_call_operand.vmem [shape: f32[1,1,128], index: 4, kind: input, shape index: {}]   ;;  %s664_s5 = inlined_call_operand.hbm [shape: bf16[128,128], index: 5, kind: input, shape index: {}]   ;;  %s665_s6 = inlined_call_operand.vmem [shape: f32[1,128], index: 6, kind: input, shape index: {}]   ;;  %s666_s7 = inlined_call_operand.hbm [shape: f32[16,128], index: 7, kind: output, shape index: {}]  }
   0x1   :  { %13 = vsyncpa [#allocation6], 0 }
   0x2   :  { %14 = vsyncpa [#allocation4], 0  ;;  %s36_s26 = sshll.u32 %s662_s3, 4  ;;  %s584_s27 = smov [#allocation5]   ;;  %s37_s26 = int_to_ptr.hbm [resolvable:$true] %s36_s26 }
   0x3   :  { %s38_s28 = sshll.u32 %s584_s27, 4  ;;  %s21_s8 = sshll.u32 %s660_s1, 4  ;;  %s39_s28 = int_to_ptr.vmem [resolvable:$true] %s38_s28  ;;  %s22_s8 = int_to_ptr.hbm [resolvable:$true] %s21_s8 }
   0x4   :  { %s585_s9 = smov 64   ;;  %s586_s10 = smov 4  }
   0x5   :  { %44 = dma.hbm_to_vmem [thread:$0]  %s37_s26, 1024, %s39_s28, [#allocation6], %s585_s9, %s585_s9, %s586_s10  }
   0x6   :  { %s587_s11 = smov [#allocation2]   ;;  %s51_s15 = sshll.u32 %s664_s5, 4  ;;  %s52_s15 = int_to_ptr.hbm [resolvable:$true] %s51_s15 }
   0x7   :  { %s23_s12 = sshll.u32 %s587_s11, 4  ;;  %s588_s3 = smov [#allocation7]   ;;  %s24_s12 = int_to_ptr.vmem [resolvable:$true] %s23_s12 }
   0x8   :  { %29 = dma.hbm_to_vmem [thread:$0]  %s22_s8, 1024, %s24_s12, [#allocation3], %s585_s9, %s585_s9, %s586_s10  }
   0x9   :  { %s53_s16 = sshll.u32 %s588_s3, 4  ;;  %s54_s16 = int_to_ptr.vmem [resolvable:$true] %s53_s16 }
   0xa   :  { %59 = dma.hbm_to_vmem [thread:$0]  %s52_s15, 1024, %s54_s16, [#allocation6], %s585_s9, %s585_s9, %s586_s10  }
   0xb   :  { %578 = dma.done.wait [#allocation3], 1024  }
   0xc   :  { %579 = vsyncadd [#allocation3], 4294966272 }
   0xd   :  { %580 = dma.done.wait [#allocation6], 2048  }
   0xe   :  { %581 = vsyncadd [#allocation6], 4294965248  ;;  %v454_v0 = vld [vmem:[#allocation2 + $0x38] sm:$0xff]  ;;  %v453_v1 = vld [vmem:[#allocation2 + $0x30] sm:$0xff]  ;;  %s589_s23 = smov [#allocation8]   ;;  %s590_s27 = smov 128  }
   0xf   :  { %145 = vmatpush.bf16.msra.mxu0 %v454_v0  ;;  %v462_v2 = vld [vmem:[#allocation5 + $0x38] sm:$0xff]  ;;  %v461_v3 = vld [vmem:[#allocation5 + $0x30] sm:$0xff]  ;;  %v452_v4 = vld [vmem:[#allocation2 + $0x28] sm:$0xff]  ;;  %s335_s24 = sshll.u32 %s589_s23, 4  ;;  %s591_s28 = smov 8   ;;  %s336_s24 = int_to_ptr.vmem [resolvable:$true] %s335_s24 }
  0x10   :  { %230 = vmatpush.bf16.msra.mxu1 %v462_v2  ;;  %v460_v5 = vld [vmem:[#allocation5 + $0x28] sm:$0xff]  ;;  %v451_v6 = vld [vmem:[#allocation2 + $0x20] sm:$0xff]  ;;  %v450_v8 = vld [vmem:[#allocation2 + $0x18] sm:$0xff] }
  0x11   :  { %v459_v7 = vld [vmem:[#allocation5 + $0x20] sm:$0xff]  ;;  %v449_v9 = vld [vmem:[#allocation2 + $0x10] sm:$0xff]  ;;  %v448_v10 = vld [vmem:[#allocation2 + $0x8] sm:$0xff] }
  0x12   :  { %v447_v11 = vld [vmem:[#allocation2] sm:$0xff]  ;;  %v75_v13 = vld [vmem:[%s659_s0 + $0x8] sm:$0xff]  ;;  %v458_v15 = vld [vmem:[#allocation5 + $0x18] sm:$0xff] }
  0x13   :  { %146 = vmatpush.bf16.msra.mxu0 %v453_v1  ;;  %v74_v12 = vld [vmem:[%s659_s0] sm:$0xff]  ;;  %v457_v16 = vld [vmem:[#allocation5 + $0x10] sm:$0xff]  ;;  %v456_v17 = vld [vmem:[#allocation5 + $0x8] sm:$0xff] }
  0x14   :  { %231 = vmatpush.bf16.msra.mxu1 %v461_v3  ;;  %v76_v14 = vpack.c.bf16 %v75_v13, %v74_v12  ;;  %v455_v18 = vld [vmem:[#allocation5] sm:$0xff]  ;;  %v470_v19 = vld [vmem:[#allocation7 + $0x38] sm:$0xff]  ;;  %v469_v20 = vld [vmem:[#allocation7 + $0x30] sm:$0xff] }
  0x15   :  { %315 = vmatpush.bf16.msra.mxu2 %v470_v19  ;;  %v468_v21 = vld [vmem:[#allocation7 + $0x28] sm:$0xff]  ;;  %v467_v22 = vld [vmem:[#allocation7 + $0x20] sm:$0xff]  ;;  %v466_v31 = vld [vmem:[#allocation7 + $0x18] sm:$0xff] }
  0x16   :  { %v479_v24 = vld [vmem:[%s661_s2] ss:$0 sm:$0xff]  ;;  %v465_v32 = vld [vmem:[#allocation7 + $0x10] sm:$0xff]  ;;  %v464_v33 = vld [vmem:[#allocation7 + $0x8] sm:$0xff] }
  0x17   :  { %147 = vmatpush.bf16.msra.mxu0 %v452_v4  ;;  %v463_v34 = vld [vmem:[#allocation7] sm:$0xff] }
  0x18   :  { %232 = vmatpush.bf16.msra.mxu1 %v460_v5  ;;  %v480_v36 = vld [vmem:[%s663_s4] ss:$0 sm:$0xff]  ;;  %s337_s4 = sshll.u32 %s666_s7, 4  ;;  %s338_s4 = int_to_ptr.hbm [resolvable:$true] %s337_s4 }
  0x19   :  { %316 = vmatpush.bf16.msra.mxu2 %v469_v20  ;;  %v481_v43 = vld [vmem:[%s665_s6] ss:$0 sm:$0xff] }
  0x1b   :  { %148 = vmatpush.bf16.msra.mxu0 %v451_v6 }
  0x1c   :  { %233 = vmatpush.bf16.msra.mxu1 %v459_v7 }
  0x1d   :  { %317 = vmatpush.bf16.msra.mxu2 %v468_v21 }
  0x1f   :  { %149 = vmatpush.bf16.msra.mxu0 %v450_v8 }
  0x20   :  { %234 = vmatpush.bf16.msra.mxu1 %v458_v15 }
  0x21   :  { %318 = vmatpush.bf16.msra.mxu2 %v467_v22 }
  0x23   :  { %150 = vmatpush.bf16.msra.mxu0 %v449_v9 }
  0x24   :  { %235 = vmatpush.bf16.msra.mxu1 %v457_v16 }
  0x25   :  { %319 = vmatpush.bf16.msra.mxu2 %v466_v31 }
  0x27   :  { %151 = vmatpush.bf16.msra.mxu0 %v448_v10 }
  0x28   :  { %236 = vmatpush.bf16.msra.mxu1 %v456_v17 }
  0x29   :  { %320 = vmatpush.bf16.msra.mxu2 %v465_v32 }
  0x2b   :  { %152 = vmatpush.bf16.msra.mxu0 %v447_v11 }
  0x2c   :  { %237 = vmatpush.bf16.msra.mxu1 %v455_v18 }
  0x2d   :  { %321 = vmatpush.bf16.msra.mxu2 %v464_v33 }
  0x2e   :  { %153 = vmatmul.bf16.vlgmr.msra.gmra.mxu0 %v76_v14 }
  0x31   :  { %322 = vmatpush.bf16.msra.mxu2 %v463_v34 }
  0xab   :  { %v154_v23 = vpop.f32.mrf.mxu0 }
  0xac   :  { %v155_v25 = vadd.f32 %v479_v24, %v154_v23 }
  0xae   :  { %v159_v28 = vmax.f32 %v155_v25, 0.0 }
  0xb3   :  { %v156_v26 = vpop.f32.mrf.mxu0 }
  0xb4   :  { %v157_v27 = vadd.f32 %v479_v24, %v156_v26 }
  0xb6   :  { %v160_v29 = vmax.f32 %v157_v27, 0.0 }
  0xb8   :  { %v161_v30 = vpack.c.bf16 %v160_v29, %v159_v28 }
  0xba   :  { %238 = vmatmul.bf16.vlgmr.msra.gmra.mxu1 %v161_v30 }
 0x137   :  { %v239_v35 = vpop.f32.mrf.mxu1 }
 0x138   :  { %v240_v37 = vadd.f32 %v480_v36, %v239_v35 }
 0x13a   :  { %v244_v40 = vmax.f32 %v240_v37, 0.0 }
 0x13f   :  { %v241_v38 = vpop.f32.mrf.mxu1 }
 0x140   :  { %v242_v39 = vadd.f32 %v480_v36, %v241_v38 }
 0x142   :  { %v245_v41 = vmax.f32 %v242_v39, 0.0 }
 0x144   :  { %v246_v42 = vpack.c.bf16 %v245_v41, %v244_v40 }
 0x146   :  { %323 = vmatmul.bf16.vlgmr.msra.gmra.mxu2 %v246_v42 }
 0x1c9   :  { %v324_v44 = vpop.f32.mrf.mxu2 }
 0x1ca   :  { %v325_v45 = vadd.f32 %v481_v43, %v324_v44 }
 0x1cc   :  { %329 = vst [vmem:[#allocation8] sm:$0xff] %v325_v45 }
 0x1d1   :  { %v326_v46 = vpop.f32.mrf.mxu2 }
 0x1d2   :  { %v327_v47 = vadd.f32 %v481_v43, %v326_v46 }
 0x1d4   :  { %330 = vst [vmem:[#allocation8 + $0x8] sm:$0xff] %v327_v47 }
 0x1d5   :  { %343 = dma.vmem_to_hbm [thread:$0]  %s336_s24, 256, %s338_s4, [#allocation4], %s590_s27, %s590_s27, %s591_s28  }
 0x1d6   :  { %582 = dma.done.wait [#allocation4], 256  }
 0x1d7   :  { %583 = vsyncadd [#allocation4], 4294967040 }
 0x1d8   :  { %348 = vsyncpa [#allocation3], 1 }
 0x1d9   :  { %349 = vsyncpa [#allocation6], 1 }
 0x1da   :  { %350 = vsyncpa [#allocation4], 1 }

</bundles_post_ra>
